<compile_context>
chip_gen: v5e
topology: v5e:2x2
jax: 0.10.0
libtpu: 0.0.40
codegen_flags: <defaults>
</compile_context>

<pallas_src>
import functools

import jax
import jax.numpy as jnp
from jax.experimental import pallas as pl
from jax.experimental.pallas import tpu as pltpu


def _round_up(x, m):
    return (x + m - 1) // m * m


def _dual_mlp_kernel(x_ref,
                     w1_ref, b_ref,
                     w2s_ref, w3s_ref,
                     w2d_ref, w3d_ref,
                     os_ref, od_ref,
                     *, nhid_p):
    """Fused dual 3-layer MLP on one batch tile (all weights resident in VMEM).

    w1_ref holds [W1s^T | W1d^T] concatenated along the output (lane) dim and
    b_ref holds [B | B], so layer 1 of both branches is ONE MXU matmul.
    """
    x = x_ref[...]

    # ---- layer 1, both branches fused (x loaded once, 2*nhid_p output lanes)
    h = jnp.tanh(jnp.dot(x, w1_ref[...], preferred_element_type=jnp.float32)
                 + b_ref[...])
    h_s = h[:, :nhid_p]          # aligned 128-lane slice, no data movement
    h_d = h[:, nhid_p:]

    # ---- branch "s" ----
    hs = jnp.tanh(jnp.dot(h_s, w2s_ref[...], preferred_element_type=jnp.float32))
    os_ref[...] = jnp.dot(hs, w3s_ref[...],
                          preferred_element_type=jnp.float32).astype(os_ref.dtype)

    # ---- branch "d" ----
    hd = jnp.tanh(jnp.dot(h_d, w2d_ref[...], preferred_element_type=jnp.float32))
    od_ref[...] = jnp.dot(hd, w3d_ref[...],
                          preferred_element_type=jnp.float32).astype(od_ref.dtype)


def _pad2d(a, rows, cols):
    pr = rows - a.shape[0]
    pc = cols - a.shape[1]
    if pr == 0 and pc == 0:
        return a
    return jnp.pad(a, ((0, pr), (0, pc)))


@jax.jit
def sd_2_forward(x, w1s_t, w2s_t, w3s_t, w1d_t, w2d_t, w3d_t, b):
    """x: [batch, Nin] f32. w*_t: (in, out) pre-transposed nn.Linear weights.
    b: [1, Nhid] shared first-layer bias. Returns (out_s, out_d), each squeezed."""
    batch, nin = x.shape
    nhid = w1s_t.shape[1]
    nout = w3s_t.shape[1]
    LANE = 128

    # ---- lane-dense feature padding (zero pad, exact for Linear+tanh) ----
    nin_p = _round_up(nin, LANE)
    nhid_p = _round_up(nhid, LANE)
    nout_p = _round_up(nout, LANE)

    # ---- batch tiling: single grid step for small batches, 256-row tiles else
    if batch <= 512:
        tile_m = _round_up(batch, 8)          # sublane-aligned, grid = (1,)
    else:
        tile_m = 256                          # MXU-row filling
    batch_p = _round_up(batch, tile_m)
    grid = (batch_p // tile_m,)

    x_p = _pad2d(x, batch_p, nin_p)

    # layer-1 weights / bias of both branches concatenated along the lane dim
    w1_cat = jnp.concatenate(
        [_pad2d(w1s_t, nin_p, nhid_p), _pad2d(w1d_t, nin_p, nhid_p)], axis=1)
    b_p = _pad2d(b, 1, nhid_p)
    b_cat = jnp.concatenate([b_p, b_p], axis=1)          # shared bias B

    w2s_p = _pad2d(w2s_t, nhid_p, nhid_p)
    w3s_p = _pad2d(w3s_t, nhid_p, nout_p)
    w2d_p = _pad2d(w2d_t, nhid_p, nhid_p)
    w3d_p = _pad2d(w3d_t, nhid_p, nout_p)

    # advisory cost hint for XLA's scheduler
    flops = (2 * batch_p * nin_p * (2 * nhid_p)                       # fused layer 1
             + 2 * 2 * batch_p * (nhid_p * nhid_p + nhid_p * nout_p))  # layers 2+3, 2 branches
    transcendentals = 2 * 2 * batch_p * nhid_p                         # tanh x2 per branch
    bytes_accessed = 4 * (x_p.size + w1_cat.size + b_cat.size
                          + w2s_p.size + w3s_p.size + w2d_p.size + w3d_p.size
                          + 2 * batch_p * nout_p)
    cost = pl.CostEstimate(flops=flops, transcendentals=transcendentals,
                           bytes_accessed=bytes_accessed)

    weight_spec = lambda r, c: pl.BlockSpec((r, c), lambda i: (0, 0))

    out_s_p, out_d_p = pl.pallas_call(
        functools.partial(_dual_mlp_kernel, nhid_p=nhid_p),
        out_shape=(jax.ShapeDtypeStruct((batch_p, nout_p), x.dtype),
                   jax.ShapeDtypeStruct((batch_p, nout_p), x.dtype)),
        grid=grid,
        in_specs=[
            pl.BlockSpec((tile_m, nin_p), lambda i: (i, 0)),   # x tile
            weight_spec(nin_p, 2 * nhid_p),                    # [W1s^T | W1d^T]
            weight_spec(1, 2 * nhid_p),                        # [B | B]
            weight_spec(nhid_p, nhid_p),                       # W2s^T
            weight_spec(nhid_p, nout_p),                       # W3s^T
            weight_spec(nhid_p, nhid_p),                       # W2d^T
            weight_spec(nhid_p, nout_p),                       # W3d^T
        ],
        out_specs=[
            pl.BlockSpec((tile_m, nout_p), lambda i: (i, 0)),
            pl.BlockSpec((tile_m, nout_p), lambda i: (i, 0)),
        ],
        compiler_params=pltpu.CompilerParams(
            dimension_semantics=("parallel",)),
        cost_estimate=cost,
    )(x_p, w1_cat, b_cat, w2s_p, w3s_p, w2d_p, w3d_p)

    out_s = jnp.squeeze(out_s_p[:batch, :nout])
    out_d = jnp.squeeze(out_d_p[:batch, :nout])
    return out_s, out_d


def reference_forward(x, w1s_t, w2s_t, w3s_t, w1d_t, w2d_t, w3d_t, b):
    hs = jnp.tanh(x @ w1s_t + b)
    hs = jnp.tanh(hs @ w2s_t)
    out_s = hs @ w3s_t
    hd = jnp.tanh(x @ w1d_t + b)
    hd = jnp.tanh(hd @ w2d_t)
    out_d = hd @ w3d_t
    return jnp.squeeze(out_s), jnp.squeeze(out_d)


if __name__ == "__main__":
    # Small shapes consistent with the module: Nin=8, Nhid_prime=32, Nout=4.
    batch, nin, nhid, nout = 16, 8, 32, 4

    key = jax.random.PRNGKey(0)
    keys = jax.random.split(key, 8)

    x = jax.random.normal(keys[0], (batch, nin), dtype=jnp.float32)
    # nn.Linear weight is (out, in); we store the transposed (in, out) form.
    w1s_t = jax.random.normal(keys[1], (nin, nhid), dtype=jnp.float32) * 0.1
    w2s_t = jax.random.normal(keys[2], (nhid, nhid), dtype=jnp.float32) * 0.1
    w3s_t = jax.random.normal(keys[3], (nhid, nout), dtype=jnp.float32) * 0.1
    w1d_t = jax.random.normal(keys[4], (nin, nhid), dtype=jnp.float32) * 0.1
    w2d_t = jax.random.normal(keys[5], (nhid, nhid), dtype=jnp.float32) * 0.1
    w3d_t = jax.random.normal(keys[6], (nhid, nout), dtype=jnp.float32) * 0.1
    b = jax.random.normal(keys[7], (1, nhid), dtype=jnp.float32) * 0.1  # shared B

    out_s, out_d = sd_2_forward(x, w1s_t, w2s_t, w3s_t, w1d_t, w2d_t, w3d_t, b)
    out_s, out_d = jax.block_until_ready((out_s, out_d))

    ref_s, ref_d = reference_forward(x, w1s_t, w2s_t, w3s_t, w1d_t, w2d_t, w3d_t, b)
    assert out_s.shape == ref_s.shape and out_d.shape == ref_d.shape
    assert jnp.allclose(out_s, ref_s, atol=1e-5, rtol=1e-5), "branch s mismatch"
    assert jnp.allclose(out_d, ref_d, atol=1e-5, rtol=1e-5), "branch d mismatch"

    print("KERNEL_OK")
</pallas_src>

<mosaic_0001>
module attributes {stable_mosaic.version = 11 : i64} {
  func.func @_dual_mlp_kernel(%arg0: i32, %arg1: memref<16x128xf32, #tpu.memory_space<vmem>>, %arg2: memref<128x256xf32, #tpu.memory_space<vmem>>, %arg3: memref<1x256xf32, #tpu.memory_space<vmem>>, %arg4: memref<128x128xf32, #tpu.memory_space<vmem>>, %arg5: memref<128x128xf32, #tpu.memory_space<vmem>>, %arg6: memref<128x128xf32, #tpu.memory_space<vmem>>, %arg7: memref<128x128xf32, #tpu.memory_space<vmem>>, %arg8: memref<16x128xf32, #tpu.memory_space<vmem>>, %arg9: memref<16x128xf32, #tpu.memory_space<vmem>>) attributes {dimension_semantics = [#tpu.dimension_semantics<parallel>], iteration_bounds = array<i64: 1>, scalar_prefetch = 0 : i64, scratch_operands = 0 : i64, tpu.core_type = #tpu.core_type<tc>, window_params = [{transform_indices = @transform_0, window_bounds = array<i64: 16, 128>}, {pipeline_mode = #tpu.pipeline_mode<synchronous>, transform_indices = @transform_1, window_bounds = array<i64: 128, 256>}, {pipeline_mode = #tpu.pipeline_mode<synchronous>, transform_indices = @transform_2, window_bounds = array<i64: 1, 256>}, {pipeline_mode = #tpu.pipeline_mode<synchronous>, transform_indices = @transform_3, window_bounds = array<i64: 128, 128>}, {pipeline_mode = #tpu.pipeline_mode<synchronous>, transform_indices = @transform_4, window_bounds = array<i64: 128, 128>}, {pipeline_mode = #tpu.pipeline_mode<synchronous>, transform_indices = @transform_5, window_bounds = array<i64: 128, 128>}, {pipeline_mode = #tpu.pipeline_mode<synchronous>, transform_indices = @transform_6, window_bounds = array<i64: 128, 128>}, {transform_indices = @transform_7, window_bounds = array<i64: 16, 128>}, {transform_indices = @transform_8, window_bounds = array<i64: 16, 128>}]} {
    %c0 = arith.constant 0 : index
    %c0_0 = arith.constant 0 : index
    %0 = vector.load %arg1[%c0, %c0_0] : memref<16x128xf32, #tpu.memory_space<vmem>>, vector<16x128xf32>
    %c0_1 = arith.constant 0 : index
    %c0_2 = arith.constant 0 : index
    %1 = vector.load %arg2[%c0_1, %c0_2] : memref<128x256xf32, #tpu.memory_space<vmem>>, vector<128x256xf32>
    %cst = arith.constant dense<0.000000e+00> : vector<16x256xf32>
    %2 = tpu.matmul %0, %1, %cst {dimension_numbers = #tpu.dot_dimension_numbers<[1], [0], [0], [1], [0, 0, 1, 1], [], []>} : vector<16x128xf32>, vector<128x256xf32>, vector<16x256xf32> -> vector<16x256xf32>
    %c0_3 = arith.constant 0 : index
    %c0_4 = arith.constant 0 : index
    %3 = vector.load %arg3[%c0_3, %c0_4] : memref<1x256xf32, #tpu.memory_space<vmem>>, vector<1x256xf32>
    %4 = vector.broadcast %3 : vector<1x256xf32> to vector<16x256xf32>
    %5 = arith.addf %2, %4 : vector<16x256xf32>
    %6 = math.tanh %5 : vector<16x256xf32>
    %7 = vector.extract_strided_slice %6 {offsets = [0, 0], sizes = [16, 128], strides = [1, 1]} : vector<16x256xf32> to vector<16x128xf32>
    %8 = vector.extract_strided_slice %6 {offsets = [0, 128], sizes = [16, 128], strides = [1, 1]} : vector<16x256xf32> to vector<16x128xf32>
    %c0_5 = arith.constant 0 : index
    %c0_6 = arith.constant 0 : index
    %9 = vector.load %arg4[%c0_5, %c0_6] : memref<128x128xf32, #tpu.memory_space<vmem>>, vector<128x128xf32>
    %cst_7 = arith.constant dense<0.000000e+00> : vector<16x128xf32>
    %10 = tpu.matmul %7, %9, %cst_7 {dimension_numbers = #tpu.dot_dimension_numbers<[1], [0], [0], [1], [0, 0, 1, 1], [], []>} : vector<16x128xf32>, vector<128x128xf32>, vector<16x128xf32> -> vector<16x128xf32>
    %11 = math.tanh %10 : vector<16x128xf32>
    %c0_8 = arith.constant 0 : index
    %c0_9 = arith.constant 0 : index
    %12 = vector.load %arg5[%c0_8, %c0_9] : memref<128x128xf32, #tpu.memory_space<vmem>>, vector<128x128xf32>
    %cst_10 = arith.constant dense<0.000000e+00> : vector<16x128xf32>
    %13 = tpu.matmul %11, %12, %cst_10 {dimension_numbers = #tpu.dot_dimension_numbers<[1], [0], [0], [1], [0, 0, 1, 1], [], []>} : vector<16x128xf32>, vector<128x128xf32>, vector<16x128xf32> -> vector<16x128xf32>
    %c0_11 = arith.constant 0 : index
    %c0_12 = arith.constant 0 : index
    %14 = vector.load %arg8[%c0_11, %c0_12] : memref<16x128xf32, #tpu.memory_space<vmem>>, vector<16x128xf32>
    tpu.vector_store %arg8[%c0_11, %c0_12], %13 {strides = array<i32>} : memref<16x128xf32, #tpu.memory_space<vmem>>, vector<16x128xf32>,
    %c0_13 = arith.constant 0 : index
    %c0_14 = arith.constant 0 : index
    %15 = vector.load %arg6[%c0_13, %c0_14] : memref<128x128xf32, #tpu.memory_space<vmem>>, vector<128x128xf32>
    %cst_15 = arith.constant dense<0.000000e+00> : vector<16x128xf32>
    %16 = tpu.matmul %8, %15, %cst_15 {dimension_numbers = #tpu.dot_dimension_numbers<[1], [0], [0], [1], [0, 0, 1, 1], [], []>} : vector<16x128xf32>, vector<128x128xf32>, vector<16x128xf32> -> vector<16x128xf32>
    %17 = math.tanh %16 : vector<16x128xf32>
    %c0_16 = arith.constant 0 : index
    %c0_17 = arith.constant 0 : index
    %18 = vector.load %arg7[%c0_16, %c0_17] : memref<128x128xf32, #tpu.memory_space<vmem>>, vector<128x128xf32>
    %cst_18 = arith.constant dense<0.000000e+00> : vector<16x128xf32>
    %19 = tpu.matmul %17, %18, %cst_18 {dimension_numbers = #tpu.dot_dimension_numbers<[1], [0], [0], [1], [0, 0, 1, 1], [], []>} : vector<16x128xf32>, vector<128x128xf32>, vector<16x128xf32> -> vector<16x128xf32>
    %c0_19 = arith.constant 0 : index
    %c0_20 = arith.constant 0 : index
    %20 = vector.load %arg9[%c0_19, %c0_20] : memref<16x128xf32, #tpu.memory_space<vmem>>, vector<16x128xf32>
    tpu.vector_store %arg9[%c0_19, %c0_20], %19 {strides = array<i32>} : memref<16x128xf32, #tpu.memory_space<vmem>>, vector<16x128xf32>,
    return
  }
  func.func @transform_0(%arg0: i32) -> (i32, i32) {
    %c0_i32 = arith.constant 0 : i32
    %c0_i32_0 = arith.constant 0 : i32
    return %arg0, %c0_i32 : i32, i32
  }
  func.func @transform_1(%arg0: i32) -> (i32, i32) {
    %c0_i32 = arith.constant 0 : i32
    %c0_i32_0 = arith.constant 0 : i32
    %c0_i32_1 = arith.constant 0 : i32
    return %c0_i32, %c0_i32_0 : i32, i32
  }
  func.func @transform_2(%arg0: i32) -> (i32, i32) {
    %c0_i32 = arith.constant 0 : i32
    %c0_i32_0 = arith.constant 0 : i32
    %c0_i32_1 = arith.constant 0 : i32
    return %c0_i32, %c0_i32_0 : i32, i32
  }
  func.func @transform_3(%arg0: i32) -> (i32, i32) {
    %c0_i32 = arith.constant 0 : i32
    %c0_i32_0 = arith.constant 0 : i32
    %c0_i32_1 = arith.constant 0 : i32
    return %c0_i32, %c0_i32_0 : i32, i32
  }
  func.func @transform_4(%arg0: i32) -> (i32, i32) {
    %c0_i32 = arith.constant 0 : i32
    %c0_i32_0 = arith.constant 0 : i32
    %c0_i32_1 = arith.constant 0 : i32
    return %c0_i32, %c0_i32_0 : i32, i32
  }
  func.func @transform_5(%arg0: i32) -> (i32, i32) {
    %c0_i32 = arith.constant 0 : i32
    %c0_i32_0 = arith.constant 0 : i32
    %c0_i32_1 = arith.constant 0 : i32
    return %c0_i32, %c0_i32_0 : i32, i32
  }
  func.func @transform_6(%arg0: i32) -> (i32, i32) {
    %c0_i32 = arith.constant 0 : i32
    %c0_i32_0 = arith.constant 0 : i32
    %c0_i32_1 = arith.constant 0 : i32
    return %c0_i32, %c0_i32_0 : i32, i32
  }
  func.func @transform_7(%arg0: i32) -> (i32, i32) {
    %c0_i32 = arith.constant 0 : i32
    %c0_i32_0 = arith.constant 0 : i32
    return %arg0, %c0_i32 : i32, i32
  }
  func.func @transform_8(%arg0: i32) -> (i32, i32) {
    %c0_i32 = arith.constant 0 : i32
    %c0_i32_0 = arith.constant 0 : i32
    return %arg0, %c0_i32 : i32, i32
  }
}

</mosaic_0001>

<bundles_post_ra>
// kernel: sd_2_forward.1
= control target key start
LH: loop header
LB: loop body
LE: loop exit
PB: predicated region body
PF: predicated region fallthrough
CT: control target
= control target key end

     0   :  { %s704_s1 = inlined_call_operand.vmem [shape: f32[128,256], index: 1, kind: input, shape index: {}]   ;;  %s705_s3 = inlined_call_operand.vmem [shape: f32[128,128], index: 3, kind: input, shape index: {}]   ;;  %s706_s0 = inlined_call_operand.vmem [shape: f32[16,128], index: 0, kind: input, shape index: {}]   ;;  %s707_s5 = inlined_call_operand.vmem [shape: f32[128,128], index: 5, kind: input, shape index: {}]   ;;  %s708_s2 = inlined_call_operand.vmem [shape: f32[1,256], index: 2, kind: input, shape index: {}]   ;;  %s709_s4 = inlined_call_operand.vmem [shape: f32[128,128], index: 4, kind: input, shape index: {}]   ;;  %s710_s6 = inlined_call_operand.vmem [shape: f32[128,128], index: 6, kind: input, shape index: {}]   ;;  %s711_s8 = inlined_call_operand.vmem [shape: f32[16,128], index: 8, kind: output, shape index: {1}]   ;;  %s712_s7 = inlined_call_operand.vmem [shape: f32[16,128], index: 7, kind: output, shape index: {0}]  }
   0x1   :  { %v60_v0 = vld [vmem:[%s704_s1 + $0xf0] sm:$0xff]  ;;  %v58_v1 = vld [vmem:[%s704_s1 + $0xe0] sm:$0xff]  ;;  %v61_v2 = vld [vmem:[%s704_s1 + $0xf8] sm:$0xff] }
   0x2   :  { %68 = vmatpush.msra.mxu0 %v60_v0  ;;  %v56_v3 = vld [vmem:[%s704_s1 + $0xd0] sm:$0xff]  ;;  %91 = vmatpush.msra.mxu1 %v61_v2  ;;  %v59_v4 = vld [vmem:[%s704_s1 + $0xe8] sm:$0xff]  ;;  %v57_v5 = vld [vmem:[%s704_s1 + $0xd8] sm:$0xff] }
   0x3   :  { %v54_v6 = vld [vmem:[%s704_s1 + $0xc0] sm:$0xff]  ;;  %v55_v7 = vld [vmem:[%s704_s1 + $0xc8] sm:$0xff]  ;;  %v52_v8 = vld [vmem:[%s704_s1 + $0xb0] sm:$0xff] }
   0x4   :  { %69 = vmatpush.msra.mxu0 %v58_v1  ;;  %92 = vmatpush.msra.mxu1 %v59_v4  ;;  %v53_v9 = vld [vmem:[%s704_s1 + $0xb8] sm:$0xff]  ;;  %v50_v10 = vld [vmem:[%s704_s1 + $0xa0] sm:$0xff]  ;;  %v51_v11 = vld [vmem:[%s704_s1 + $0xa8] sm:$0xff] }
   0x5   :  { %v48_v12 = vld [vmem:[%s704_s1 + $0x90] sm:$0xff]  ;;  %v49_v13 = vld [vmem:[%s704_s1 + $0x98] sm:$0xff]  ;;  %v46_v16 = vld [vmem:[%s704_s1 + $0x80] sm:$0xff] }
   0x6   :  { %70 = vmatpush.msra.mxu0 %v56_v3  ;;  %93 = vmatpush.msra.mxu1 %v57_v5  ;;  %v133_v14 = vld [vmem:[%s705_s3 + $0x78] sm:$0xff]  ;;  %v132_v15 = vld [vmem:[%s705_s3 + $0x70] sm:$0xff]  ;;  %v47_v17 = vld [vmem:[%s704_s1 + $0x88] sm:$0xff] }
   0x7   :  { %134 = vmatpush.msra.mxu2 %v133_v14  ;;  %v131_v18 = vld [vmem:[%s705_s3 + $0x68] sm:$0xff]  ;;  %v44_v19 = vld [vmem:[%s704_s1 + $0x70] sm:$0xff]  ;;  %v45_v20 = vld [vmem:[%s704_s1 + $0x78] sm:$0xff] }
   0x8   :  { %71 = vmatpush.msra.mxu0 %v54_v6  ;;  %94 = vmatpush.msra.mxu1 %v55_v7  ;;  %v130_v21 = vld [vmem:[%s705_s3 + $0x60] sm:$0xff]  ;;  %v43_v23 = vld [vmem:[%s704_s1 + $0x68] sm:$0xff]  ;;  %v129_v24 = vld [vmem:[%s705_s3 + $0x58] sm:$0xff] }
   0x9   :  { %135 = vmatpush.msra.mxu2 %v132_v15  ;;  %v42_v22 = vld [vmem:[%s704_s1 + $0x60] sm:$0xff]  ;;  %v40_v25 = vld [vmem:[%s704_s1 + $0x50] sm:$0xff]  ;;  %v41_v26 = vld [vmem:[%s704_s1 + $0x58] sm:$0xff] }
   0xa   :  { %72 = vmatpush.msra.mxu0 %v52_v8  ;;  %95 = vmatpush.msra.mxu1 %v53_v9  ;;  %v128_v27 = vld [vmem:[%s705_s3 + $0x50] sm:$0xff]  ;;  %v38_v28 = vld [vmem:[%s704_s1 + $0x40] sm:$0xff]  ;;  %v39_v29 = vld [vmem:[%s704_s1 + $0x48] sm:$0xff] }
   0xb   :  { %136 = vmatpush.msra.mxu2 %v131_v18  ;;  %v127_v30 = vld [vmem:[%s705_s3 + $0x48] sm:$0xff]  ;;  %v36_v31 = vld [vmem:[%s704_s1 + $0x30] sm:$0xff]  ;;  %v37_v32 = vld [vmem:[%s704_s1 + $0x38] sm:$0xff] }
   0xc   :  { %73 = vmatpush.msra.mxu0 %v50_v10  ;;  %96 = vmatpush.msra.mxu1 %v51_v11  ;;  %v126_v33 = vld [vmem:[%s705_s3 + $0x40] sm:$0xff]  ;;  %v35_v35 = vld [vmem:[%s704_s1 + $0x28] sm:$0xff]  ;;  %v125_v36 = vld [vmem:[%s705_s3 + $0x38] sm:$0xff] }
   0xd   :  { %137 = vmatpush.msra.mxu2 %v130_v21  ;;  %v34_v34 = vld [vmem:[%s704_s1 + $0x20] sm:$0xff]  ;;  %v32_v37 = vld [vmem:[%s704_s1 + $0x10] sm:$0xff]  ;;  %v33_v38 = vld [vmem:[%s704_s1 + $0x18] sm:$0xff] }
   0xe   :  { %74 = vmatpush.msra.mxu0 %v48_v12  ;;  %97 = vmatpush.msra.mxu1 %v49_v13  ;;  %v124_v39 = vld [vmem:[%s705_s3 + $0x30] sm:$0xff]  ;;  %v30_v40 = vld [vmem:[%s704_s1] sm:$0xff]  ;;  %v31_v42 = vld [vmem:[%s704_s1 + $0x8] sm:$0xff] }
   0xf   :  { %138 = vmatpush.msra.mxu2 %v129_v24  ;;  %v28_v41 = vld [vmem:[%s706_s0] sm:$0xff]  ;;  %v123_v43 = vld [vmem:[%s705_s3 + $0x28] sm:$0xff]  ;;  %v215_v44 = vld [vmem:[%s707_s5 + $0x78] sm:$0xff] }
  0x10   :  { %75 = vmatpush.msra.mxu0 %v46_v16  ;;  %98 = vmatpush.msra.mxu1 %v47_v17  ;;  %v122_v45 = vld [vmem:[%s705_s3 + $0x20] sm:$0xff]  ;;  %v214_v46 = vld [vmem:[%s707_s5 + $0x70] sm:$0xff]  ;;  %v121_v47 = vld [vmem:[%s705_s3 + $0x18] sm:$0xff] }
  0x11   :  { %139 = vmatpush.msra.mxu2 %v128_v27  ;;  %v213_v48 = vld [vmem:[%s707_s5 + $0x68] sm:$0xff]  ;;  %v120_v49 = vld [vmem:[%s705_s3 + $0x10] sm:$0xff]  ;;  %v212_v52 = vld [vmem:[%s707_s5 + $0x60] sm:$0xff] }
  0x12   :  { %76 = vmatpush.msra.mxu0 %v44_v19  ;;  %99 = vmatpush.msra.mxu1 %v45_v20  ;;  %v29_v50 = vld [vmem:[%s706_s0 + $0x8] sm:$0xff]  ;;  %v118_v53 = vld [vmem:[%s705_s3] sm:$0xff]  ;;  %v211_v54 = vld [vmem:[%s707_s5 + $0x58] sm:$0xff] }
  0x13   :  { %140 = vmatpush.msra.mxu2 %v127_v30  ;;  %v119_v51 = vld [vmem:[%s705_s3 + $0x8] sm:$0xff]  ;;  %v210_v55 = vld [vmem:[%s707_s5 + $0x50] sm:$0xff]  ;;  %v208_v57 = vld [vmem:[%s707_s5 + $0x40] sm:$0xff] }
  0x14   :  { %77 = vmatpush.msra.mxu0 %v42_v22  ;;  %100 = vmatpush.msra.mxu1 %v43_v23  ;;  %v209_v56 = vld [vmem:[%s707_s5 + $0x48] sm:$0xff]  ;;  %v207_v58 = vld [vmem:[%s707_s5 + $0x38] sm:$0xff]  ;;  %v206_v59 = vld [vmem:[%s707_s5 + $0x30] sm:$0xff] }
  0x15   :  { %141 = vmatpush.msra.mxu2 %v126_v33  ;;  %v205_v60 = vld [vmem:[%s707_s5 + $0x28] sm:$0xff]  ;;  %v204_v61 = vld [vmem:[%s707_s5 + $0x20] sm:$0xff]  ;;  %v203_v62 = vld [vmem:[%s707_s5 + $0x18] sm:$0xff] }
  0x16   :  { %78 = vmatpush.msra.mxu0 %v40_v25  ;;  %101 = vmatpush.msra.mxu1 %v41_v26  ;;  %v202_v63 = vld [vmem:[%s707_s5 + $0x10] sm:$0xff]  ;;  %v201_v0 = vld [vmem:[%s707_s5 + $0x8] sm:$0xff]  ;;  %v200_v1 = vld [vmem:[%s707_s5] sm:$0xff] }
  0x17   :  { %142 = vmatpush.msra.mxu2 %v125_v36  ;;  %v62_v2 = vld [vmem:[%s708_s2] sm:$0x3]  ;;  %v174_v3 = vld [vmem:[%s709_s4 + $0x78] sm:$0xff]  ;;  %v173_v4 = vld [vmem:[%s709_s4 + $0x70] sm:$0xff] }
  0x18   :  { %79 = vmatpush.msra.mxu0 %v38_v28  ;;  %102 = vmatpush.msra.mxu1 %v39_v29  ;;  %v172_v5 = vld [vmem:[%s709_s4 + $0x68] sm:$0xff]  ;;  %v64_v6 = vperm.slane %v62_v2, 0  ;;  %v596_v7 = vld [vmem:[%s710_s6 + $0x78] sm:$0xff]  ;;  %v601_v8 = vld [vmem:[%s710_s6 + $0x70] sm:$0xff]  ;;  %v65_v9 = vperm.slane %v62_v2, 1 }
  0x19   :  { %143 = vmatpush.msra.mxu2 %v124_v39  ;;  %175 = vmatpush.msra.mxu3 %v174_v3  ;;  %v171_v10 = vld [vmem:[%s709_s4 + $0x60] sm:$0xff]  ;;  %v610_v11 = vld [vmem:[%s710_s6 + $0x68] sm:$0xff]  ;;  %v170_v13 = vld [vmem:[%s709_s4 + $0x58] sm:$0xff] }
  0x1a   :  { %80 = vmatpush.msra.mxu0 %v36_v31  ;;  %103 = vmatpush.msra.mxu1 %v37_v32  ;;  %v253_v16 = vld [vmem:[%s710_s6 + $0x60] sm:$0xff]  ;;  %v169_v18 = vld [vmem:[%s709_s4 + $0x50] sm:$0xff]  ;;  %v252_v19 = vld [vmem:[%s710_s6 + $0x58] sm:$0xff] }
  0x1b   :  { %144 = vmatpush.msra.mxu2 %v123_v43  ;;  %176 = vmatpush.msra.mxu3 %v173_v4  ;;  %v168_v20 = vld [vmem:[%s709_s4 + $0x48] sm:$0xff]  ;;  %v251_v21 = vld [vmem:[%s710_s6 + $0x50] sm:$0xff]  ;;  %v167_v22 = vld [vmem:[%s709_s4 + $0x40] sm:$0xff] }
  0x1c   :  { %81 = vmatpush.msra.mxu0 %v34_v34  ;;  %104 = vmatpush.msra.mxu1 %v35_v35  ;;  %v250_v23 = vld [vmem:[%s710_s6 + $0x48] sm:$0xff]  ;;  %v166_v25 = vld [vmem:[%s709_s4 + $0x38] sm:$0xff]  ;;  %v249_v28 = vld [vmem:[%s710_s6 + $0x40] sm:$0xff] }
  0x1d   :  { %145 = vmatpush.msra.mxu2 %v122_v45  ;;  %177 = vmatpush.msra.mxu3 %v172_v5  ;;  %v165_v31 = vld [vmem:[%s709_s4 + $0x30] sm:$0xff]  ;;  %v248_v32 = vld [vmem:[%s710_s6 + $0x38] sm:$0xff]  ;;  %v164_v33 = vld [vmem:[%s709_s4 + $0x28] sm:$0xff] }
  0x1e   :  { %82 = vmatpush.msra.mxu0 %v32_v37  ;;  %105 = vmatpush.msra.mxu1 %v33_v38  ;;  %v247_v35 = vld [vmem:[%s710_s6 + $0x30] sm:$0xff]  ;;  %v163_v36 = vld [vmem:[%s709_s4 + $0x20] sm:$0xff]  ;;  %v246_v37 = vld [vmem:[%s710_s6 + $0x28] sm:$0xff] }
  0x1f   :  { %146 = vmatpush.msra.mxu2 %v121_v47  ;;  %178 = vmatpush.msra.mxu3 %v171_v10  ;;  %v162_v38 = vld [vmem:[%s709_s4 + $0x18] sm:$0xff]  ;;  %v242_v47 = vld [vmem:[%s710_s6 + $0x8] sm:$0xff] }
  0x20   :  { %83 = vmatpush.msra.mxu0 %v30_v40  ;;  %106 = vmatpush.msra.mxu1 %v31_v42  ;;  %v161_v40 = vld [vmem:[%s709_s4 + $0x10] sm:$0xff]  ;;  %v159_v42 = vld [vmem:[%s709_s4] sm:$0xff]  ;;  %v244_v45 = vld [vmem:[%s710_s6 + $0x18] sm:$0xff] }
  0x21   :  { %84 = vmatmul.f32.vlgmr.msra.gmra.mxu0 %v28_v41  ;;  %107 = vmatmul.f32.vlgmr.msra.gmra.mxu1 %v28_v41  ;;  %v160_v41 = vld [vmem:[%s709_s4 + $0x8] sm:$0xff] }
  0x22   :  { %216 = vmatpush.msrb.mxu0 %v215_v44  ;;  %147 = vmatpush.msra.mxu2 %v120_v49 }
  0x23   :  { %257 = vmatpush.msrb.mxu1 %v596_v7  ;;  %179 = vmatpush.msra.mxu3 %v170_v13 }
  0x24   :  { %217 = vmatpush.msrb.mxu0 %v214_v46  ;;  %148 = vmatpush.msra.mxu2 %v119_v51 }
  0x25   :  { %258 = vmatpush.msrb.mxu1 %v601_v8  ;;  %180 = vmatpush.msra.mxu3 %v169_v18 }
  0x26   :  { %218 = vmatpush.msrb.mxu0 %v213_v48  ;;  %149 = vmatpush.msra.mxu2 %v118_v53 }
  0x27   :  { %259 = vmatpush.msrb.mxu1 %v610_v11  ;;  %181 = vmatpush.msra.mxu3 %v168_v20 }
  0x28   :  { %219 = vmatpush.msrb.mxu0 %v212_v52  ;;  %290 = vmatpush.msrb.mxu2 %v215_v44  ;;  %v245_v44 = vld [vmem:[%s710_s6 + $0x20] sm:$0xff] }
  0x29   :  { %87 = vmatmul.f32.gmra.mxu0 %v29_v50  ;;  %110 = vmatmul.f32.gmra.mxu1 %v29_v50 }
  0x2a   :  { %220 = vmatpush.msrb.mxu0 %v211_v54  ;;  %291 = vmatpush.msrb.mxu2 %v214_v46  ;;  %v243_v46 = vld [vmem:[%s710_s6 + $0x10] sm:$0xff] }
  0x2b   :  { %260 = vmatpush.msrb.mxu1 %v253_v16  ;;  %182 = vmatpush.msra.mxu3 %v167_v22 }
  0x2c   :  { %221 = vmatpush.msrb.mxu0 %v210_v55  ;;  %292 = vmatpush.msrb.mxu2 %v213_v48  ;;  %v241_v48 = vld [vmem:[%s710_s6] sm:$0xff] }
  0x2d   :  { %261 = vmatpush.msrb.mxu1 %v252_v19  ;;  %183 = vmatpush.msra.mxu3 %v166_v25 }
  0x2e   :  { %222 = vmatpush.msrb.mxu0 %v209_v56  ;;  %293 = vmatpush.msrb.mxu2 %v212_v52 }
  0x2f   :  { %262 = vmatpush.msrb.mxu1 %v251_v21  ;;  %184 = vmatpush.msra.mxu3 %v165_v31 }
  0x30   :  { %294 = vmatpush.msrb.mxu2 %v211_v54  ;;  %223 = vmatpush.msrb.mxu0 %v208_v57 }
  0x31   :  { %263 = vmatpush.msrb.mxu1 %v250_v23  ;;  %185 = vmatpush.msra.mxu3 %v164_v33 }
  0x32   :  { %295 = vmatpush.msrb.mxu2 %v210_v55  ;;  %224 = vmatpush.msrb.mxu0 %v207_v58 }
  0x33   :  { %264 = vmatpush.msrb.mxu1 %v249_v28  ;;  %186 = vmatpush.msra.mxu3 %v163_v36 }
  0x34   :  { %296 = vmatpush.msrb.mxu2 %v209_v56  ;;  %225 = vmatpush.msrb.mxu0 %v206_v59 }
  0x35   :  { %265 = vmatpush.msrb.mxu1 %v248_v32  ;;  %187 = vmatpush.msra.mxu3 %v162_v38 }
  0x36   :  { %297 = vmatpush.msrb.mxu2 %v208_v57  ;;  %226 = vmatpush.msrb.mxu0 %v205_v60 }
  0x37   :  { %266 = vmatpush.msrb.mxu1 %v247_v35  ;;  %188 = vmatpush.msra.mxu3 %v161_v40 }
  0x38   :  { %298 = vmatpush.msrb.mxu2 %v207_v58  ;;  %227 = vmatpush.msrb.mxu0 %v204_v61 }
  0x39   :  { %267 = vmatpush.msrb.mxu1 %v246_v37  ;;  %189 = vmatpush.msra.mxu3 %v160_v41 }
  0x3a   :  { %299 = vmatpush.msrb.mxu2 %v206_v59  ;;  %228 = vmatpush.msrb.mxu0 %v203_v62 }
  0x3b   :  { %190 = vmatpush.msra.mxu3 %v159_v42  ;;  %268 = vmatpush.msrb.mxu1 %v245_v44 }
  0x3c   :  { %300 = vmatpush.msrb.mxu2 %v205_v60  ;;  %229 = vmatpush.msrb.mxu0 %v202_v63 }
  0x3d   :  { %306 = vmatpush.msrb.mxu3 %v596_v7  ;;  %269 = vmatpush.msrb.mxu1 %v244_v45 }
  0x3e   :  { %301 = vmatpush.msrb.mxu2 %v204_v61  ;;  %230 = vmatpush.msrb.mxu0 %v201_v0 }
  0x3f   :  { %307 = vmatpush.msrb.mxu3 %v601_v8  ;;  %270 = vmatpush.msrb.mxu1 %v243_v46 }
  0x40   :  { %302 = vmatpush.msrb.mxu2 %v203_v62  ;;  %231 = vmatpush.msrb.mxu0 %v200_v1 }
  0x41   :  { %308 = vmatpush.msrb.mxu3 %v610_v11  ;;  %271 = vmatpush.msrb.mxu1 %v242_v47 }
  0x42   :  { %303 = vmatpush.msrb.mxu2 %v202_v63 }
  0x43   :  { %309 = vmatpush.msrb.mxu3 %v253_v16  ;;  %272 = vmatpush.msrb.mxu1 %v241_v48 }
  0x44   :  { %304 = vmatpush.msrb.mxu2 %v201_v0 }
  0x45   :  { %310 = vmatpush.msrb.mxu3 %v252_v19 }
  0x46   :  { %305 = vmatpush.msrb.mxu2 %v200_v1 }
  0x47   :  { %311 = vmatpush.msrb.mxu3 %v251_v21 }
  0x49   :  { %312 = vmatpush.msrb.mxu3 %v250_v23 }
  0x4b   :  { %313 = vmatpush.msrb.mxu3 %v249_v28 }
  0x4d   :  { %314 = vmatpush.msrb.mxu3 %v248_v32 }
  0x4f   :  { %315 = vmatpush.msrb.mxu3 %v247_v35 }
  0x51   :  { %316 = vmatpush.msrb.mxu3 %v246_v37 }
  0x53   :  { %317 = vmatpush.msrb.mxu3 %v245_v44 }
  0x55   :  { %318 = vmatpush.msrb.mxu3 %v244_v45 }
  0x57   :  { %319 = vmatpush.msrb.mxu3 %v243_v46 }
  0x59   :  { %320 = vmatpush.msrb.mxu3 %v242_v47 }
  0x5b   :  { %321 = vmatpush.msrb.mxu3 %v241_v48 }
  0x9e   :  { %v85_v12 = vpop.f32.mrf.mxu0  ;;  %v108_v15 = vpop.f32.mrf.mxu1 }
  0x9f   :  { %v86_v14 = vadd.f32 %v85_v12, %v64_v6  ;;  %v109_v17 = vadd.f32 %v108_v15, %v65_v9 }
  0xa1   :  { %322 = vtanh.f32 %v86_v14 }
  0xa2   :  { %324 = vtanh.f32 %v109_v17 }
  0xa6   :  { %v88_v24 = vpop.f32.mrf.mxu0  ;;  %v111_v30 = vpop.f32.mrf.mxu1 }
  0xa7   :  { %v323_v26 = vpop.eup %322  ;;  %v89_v27 = vadd.f32 %v88_v24, %v64_v6  ;;  %v112_v34 = vadd.f32 %v111_v30, %v65_v9 }
  0xa8   :  { %v325_v29 = vpop.eup %324  ;;  %150 = vmatmul.f32.vlgmr.msra.gmra.mxu2 %v323_v26 }
  0xa9   :  { %326 = vtanh.f32 %v89_v27  ;;  %232 = vmatmul.f32.vlgmr.msrb.gmra.mxu0 %v325_v29 }
  0xaa   :  { %328 = vtanh.f32 %v112_v34 }
  0xaf   :  { %v327_v39 = vpop.eup %326 }
  0xb0   :  { %153 = vmatmul.f32.gmra.mxu2 %v327_v39  ;;  %v329_v43 = vpop.eup %328 }
  0xb8   :  { %235 = vmatmul.f32.vlgmr.msrb.gmra.mxu2 %v329_v43 }
 0x126   :  { %v233_v49 = vpop.f32.mrf.mxu0 }
 0x127   :  { %330 = vtanh.f32 %v233_v49 }
 0x12b   :  { %v151_v50 = vpop.f32.mrf.mxu2 }
 0x12c   :  { %332 = vtanh.f32 %v151_v50 }
 0x12d   :  { %v331_v51 = vpop.eup %330 }
 0x12e   :  { %273 = vmatmul.f32.vlgmr.msrb.gmra.mxu1 %v331_v51 }
 0x132   :  { %v333_v52 = vpop.eup %332 }
 0x133   :  { %v154_v53 = vpop.f32.mrf.mxu2  ;;  %191 = vmatmul.f32.vlgmr.msra.gmra.mxu3 %v333_v52 }
 0x134   :  { %334 = vtanh.f32 %v154_v53 }
 0x13a   :  { %v335_v54 = vpop.eup %334 }
 0x13b   :  { %194 = vmatmul.f32.gmra.mxu3 %v335_v54  ;;  %v236_v55 = vpop.f32.mrf.mxu2 }
 0x13c   :  { %336 = vtanh.f32 %v236_v55 }
 0x142   :  { %v337_v56 = vpop.eup %336 }
 0x143   :  { %276 = vmatmul.f32.vlgmr.msrb.gmra.mxu3 %v337_v56 }
 0x1ab   :  { %v274_v57 = vpop.f32.mrf.mxu1 }
 0x1ac   :  { %280 = vst [vmem:[%s711_s8] sm:$0xff] %v274_v57 }
 0x1b6   :  { %v192_v58 = vpop.f32.mrf.mxu3 }
 0x1b7   :  { %198 = vst [vmem:[%s712_s7] sm:$0xff] %v192_v58 }
 0x1be   :  { %v195_v59 = vpop.f32.mrf.mxu3 }
 0x1bf   :  { %199 = vst [vmem:[%s712_s7 + $0x8] sm:$0xff] %v195_v59 }
 0x1c6   :  { %v277_v60 = vpop.f32.mrf.mxu3 }
 0x1c7   :  { %281 = vst [vmem:[%s711_s8 + $0x8] sm:$0xff] %v277_v60 }

</bundles_post_ra>
